<compile_context>
chip_gen: v6e
topology: v6e:2x2x1
jax: 0.10.0
libtpu: 0.0.40
codegen_flags: <defaults>
</compile_context>

<pallas_src>
import functools

import jax
import jax.numpy as jnp
from jax.experimental import pallas as pl
from jax.experimental.pallas import tpu as pltpu


def _round_up(x, m):
    return ((x + m - 1) // m) * m


def _tagging_fnn_kernel(h_ref, w_ref, b_ref, ml_ref, prob_ref, part_ref, *, pad_id):
    # h_ref:    (TILE, H)         input dtype  hidden states tile
    # w_ref:    (H, num_tags)     bf16         linear weight (transposed), resident
    # b_ref:    (1, num_tags)     f32          linear bias, resident
    # ml_ref:   (TILE, 1)         int32        packed = (labels << 1) | mask_bit
    # prob_ref: (TILE, num_tags)  f32          softmax probabilities tile
    # part_ref: (8, 128)          f32          per-tile loss partials:
    #                                          [0,0]=sum(nll*valid), [0,1]=sum(valid)
    h = h_ref[...].astype(jnp.bfloat16)                       # in-register cast
    logits = jnp.dot(h, w_ref[...], preferred_element_type=jnp.float32)
    logits = logits + b_ref[...]

    packed = ml_ref[...]                                      # (TILE, 1) int32
    mask = (packed & 1).astype(jnp.float32)                   # (TILE, 1)
    labels = packed >> 1                                      # (TILE, 1) int32 >= 0

    # logits += (1 - mask)[..., None] * -1e32
    logits = logits + (1.0 - mask) * (-1e32)

    # softmax over the tag (lane) axis
    m = jnp.max(logits, axis=-1, keepdims=True)
    e = jnp.exp(logits - m)
    s = jnp.sum(e, axis=-1, keepdims=True)
    prob_ref[...] = e * pl.reciprocal(s, approx=True)         # EUP vrcp (idle slot)

    # CrossEntropyLoss(ignore_index=pad_id) partials for this tile (exact f32 path)
    log_softmax = (logits - m) - jnp.log(s)
    tag_ids = jax.lax.broadcasted_iota(jnp.int32, logits.shape, 1)
    onehot = (tag_ids == labels).astype(jnp.float32)
    nll = -jnp.sum(onehot * log_softmax, axis=-1, keepdims=True)   # (TILE, 1)
    valid = (labels != pad_id).astype(jnp.float32)                 # (TILE, 1)
    total = jnp.sum(nll * valid)
    count = jnp.sum(valid)

    row = jax.lax.broadcasted_iota(jnp.int32, part_ref.shape, 0)
    lane = jax.lax.broadcasted_iota(jnp.int32, part_ref.shape, 1)
    part_ref[...] = jnp.where(
        (row == 0) & (lane == 0), total,
        jnp.where((row == 0) & (lane == 1), count, 0.0))


def tagging_fnn_decoder(hiddens, mask, weight, bias, labels=None, pad_id=0,
                        tile_rows=1024):
    """hiddens: (B, T, H), mask: (B, T), weight: (num_tags, H), bias: (num_tags,),
    labels: (B, T) int or None.

    Returns (prob (B, T, num_tags) f32, loss scalar f32) when labels is given,
    otherwise (prob,), mirroring the PyTorch module.
    """
    B, T, H = hiddens.shape
    num_tags = weight.shape[0]
    N = B * T

    loss_requested = labels is not None
    if labels is None:
        labels = jnp.full((B, T), int(pad_id), jnp.int32)   # loss partials discarded

    # --- tile selection: big rows-tile, clamped to a conservative VMEM budget ----
    in_bytes = jnp.dtype(hiddens.dtype).itemsize
    per_row_bytes = 2 * (H * in_bytes + num_tags * 4)        # dbl-buffered in + out
    vmem_budget = 24 * 1024 * 1024                            # < 32 MiB scoped default
    tile_cap = max(16, (vmem_budget // per_row_bytes) // 16 * 16)
    tile = min(tile_rows, tile_cap, _round_up(N, 16))
    n_pad = _round_up(N, tile)
    num_tiles = n_pad // tile

    # hiddens stay in their native dtype (no extra HBM cast pass); weight/bias are
    # tiny and resident, so wrapper-side transpose/cast is negligible.
    h2 = hiddens.reshape(N, H)
    w2 = weight.T.astype(jnp.bfloat16)                        # (H, num_tags)
    b2 = bias.reshape(1, num_tags).astype(jnp.float32)

    # Pack mask + labels into one int32 column: (labels << 1) | mask_bit.
    mask_bit = (mask.reshape(N) != 0).astype(jnp.int32)
    lab_i = labels.reshape(N).astype(jnp.int32)
    packed = ((lab_i << 1) | mask_bit).reshape(N, 1)

    if n_pad != N:
        h2 = jnp.pad(h2, ((0, n_pad - N), (0, 0)))
        # padded rows: mask=0, label=pad_id -> ignored by the loss, sliced off prob
        pad_col = jnp.full((n_pad - N, 1), int(pad_id) << 1, jnp.int32)
        packed = jnp.concatenate([packed, pad_col], axis=0)

    kernel = functools.partial(_tagging_fnn_kernel, pad_id=pad_id)

    prob_flat, partials = pl.pallas_call(
        kernel,
        grid=(num_tiles,),
        in_specs=[
            pl.BlockSpec((tile, H), lambda i: (i, 0)),          # hiddens tile
            pl.BlockSpec((H, num_tags), lambda i: (0, 0)),      # weight (resident)
            pl.BlockSpec((1, num_tags), lambda i: (0, 0)),      # bias (resident)
            pl.BlockSpec((tile, 1), lambda i: (i, 0)),          # packed mask/labels
        ],
        out_specs=(
            pl.BlockSpec((tile, num_tags), lambda i: (i, 0)),   # prob tile
            pl.BlockSpec((8, 128), lambda i: (i, 0)),           # loss partials
        ),
        out_shape=(
            jax.ShapeDtypeStruct((n_pad, num_tags), jnp.float32),
            jax.ShapeDtypeStruct((num_tiles * 8, 128), jnp.float32),
        ),
        compiler_params=pltpu.CompilerParams(
            dimension_semantics=("parallel",)),
    )(h2, w2, b2, packed)

    prob = prob_flat[:N].reshape(B, T, num_tags)
    if not loss_requested:
        return (prob,)

    # Finalize the cross-entropy: sum per-tile partials, divide once.
    total = jnp.sum(partials[:, 0])
    count = jnp.sum(partials[:, 1])
    loss = total / count   # NaN if every token is ignored, mirroring PyTorch.
    return prob, loss


if __name__ == "__main__":
    B, T, H, NUM_TAGS, PAD_ID = 2, 8, 32, 16, 0

    key = jax.random.PRNGKey(0)
    k_h, k_w, k_b, k_lab = jax.random.split(key, 4)

    # deterministic "parameter init" matching nn.Linear(input_size, num_tags) shapes
    bound = 1.0 / (H ** 0.5)
    weight = jax.random.uniform(k_w, (NUM_TAGS, H), jnp.float32, -bound, bound)
    bias = jax.random.uniform(k_b, (NUM_TAGS,), jnp.float32, -bound, bound)

    hiddens = jax.random.normal(k_h, (B, T, H), jnp.float32)

    # mask: first sequence full, second sequence has 3 padded tokens at the end
    mask = jnp.ones((B, T), jnp.float32)
    mask = mask.at[1, T - 3:].set(0.0)

    labels = jax.random.randint(k_lab, (B, T), 1, NUM_TAGS).astype(jnp.int32)
    labels = jnp.where(mask > 0, labels, PAD_ID)  # padded positions -> ignored

    prob, loss = tagging_fnn_decoder(hiddens, mask, weight, bias, labels, PAD_ID)
    jax.block_until_ready((prob, loss))

    # sanity check against a pure-JAX (f32) reference; loose tolerance covers the
    # intentional bf16 matmul operands + approx reciprocal in the kernel.
    logits_ref = jnp.einsum("bth,nh->btn", hiddens, weight) + bias
    logits_ref = logits_ref + (1.0 - mask)[..., None] * -1e32
    prob_ref = jax.nn.softmax(logits_ref, axis=-1)
    logp_ref = jax.nn.log_softmax(logits_ref, axis=-1)
    nll_ref = -jnp.take_along_axis(logp_ref, labels[..., None], axis=-1)[..., 0]
    valid = (labels != PAD_ID).astype(jnp.float32)
    loss_ref = jnp.sum(nll_ref * valid) / jnp.sum(valid)

    assert prob.shape == (B, T, NUM_TAGS)
    assert jnp.allclose(prob, prob_ref, atol=2e-2), "prob mismatch"
    assert jnp.allclose(loss, loss_ref, atol=2e-2), "loss mismatch"
    assert bool(jnp.all(jnp.isfinite(prob))), "non-finite prob"

    # prob-only path (labels=None branch of the PyTorch forward)
    (prob_only,) = tagging_fnn_decoder(hiddens, mask, weight, bias, None, PAD_ID)
    jax.block_until_ready(prob_only)
    assert jnp.allclose(prob_only, prob), "prob-only path mismatch"

    print("KERNEL_OK")
</pallas_src>

<mosaic_0001>
module attributes {stable_mosaic.version = 11 : i64} {
  func.func @_tagging_fnn_kernel(%arg0: i32, %arg1: memref<16x32xf32, #tpu.memory_space<vmem>>, %arg2: memref<32x16xbf16, #tpu.memory_space<vmem>>, %arg3: memref<1x16xf32, #tpu.memory_space<vmem>>, %arg4: memref<16x1xi32, #tpu.memory_space<vmem>>, %arg5: memref<16x16xf32, #tpu.memory_space<vmem>>, %arg6: memref<8x128xf32, #tpu.memory_space<vmem>>) attributes {dimension_semantics = [#tpu.dimension_semantics<parallel>], iteration_bounds = array<i64: 1>, scalar_prefetch = 0 : i64, scratch_operands = 0 : i64, tpu.core_type = #tpu.core_type<tc>, window_params = [{transform_indices = @transform_0, window_bounds = array<i64: 16, 32>}, {pipeline_mode = #tpu.pipeline_mode<synchronous>, transform_indices = @transform_1, window_bounds = array<i64: 32, 16>}, {pipeline_mode = #tpu.pipeline_mode<synchronous>, transform_indices = @transform_2, window_bounds = array<i64: 1, 16>}, {transform_indices = @transform_3, window_bounds = array<i64: 16, 1>}, {transform_indices = @transform_4, window_bounds = array<i64: 16, 16>}, {transform_indices = @transform_5, window_bounds = array<i64: 8, 128>}]} {
    %c0 = arith.constant 0 : index
    %c0_0 = arith.constant 0 : index
    %0 = vector.load %arg1[%c0, %c0_0] : memref<16x32xf32, #tpu.memory_space<vmem>>, vector<16x32xf32>
    %1 = arith.truncf %0 : vector<16x32xf32> to vector<16x32xbf16>
    %c0_1 = arith.constant 0 : index
    %c0_2 = arith.constant 0 : index
    %2 = vector.load %arg2[%c0_1, %c0_2] : memref<32x16xbf16, #tpu.memory_space<vmem>>, vector<32x16xbf16>
    %cst = arith.constant dense<0.000000e+00> : vector<16x16xf32>
    %3 = tpu.matmul %1, %2, %cst {dimension_numbers = #tpu.dot_dimension_numbers<[1], [0], [0], [1], [0, 0, 1, 1], [], []>} : vector<16x32xbf16>, vector<32x16xbf16>, vector<16x16xf32> -> vector<16x16xf32>
    %c0_3 = arith.constant 0 : index
    %c0_4 = arith.constant 0 : index
    %4 = vector.load %arg3[%c0_3, %c0_4] : memref<1x16xf32, #tpu.memory_space<vmem>>, vector<1x16xf32>
    %5 = vector.broadcast %4 : vector<1x16xf32> to vector<16x16xf32>
    %6 = arith.addf %3, %5 : vector<16x16xf32>
    %c0_5 = arith.constant 0 : index
    %c0_6 = arith.constant 0 : index
    %7 = vector.load %arg4[%c0_5, %c0_6] : memref<16x1xi32, #tpu.memory_space<vmem>>, vector<16x1xi32>
    %c1_i32 = arith.constant 1 : i32
    %8 = vector.broadcast %c1_i32 : i32 to vector<16x1xi32>
    %9 = arith.andi %7, %8 : vector<16x1xi32>
    %10 = arith.sitofp %9 : vector<16x1xi32> to vector<16x1xf32>
    %c1_i32_7 = arith.constant 1 : i32
    %11 = vector.broadcast %c1_i32_7 : i32 to vector<16x1xi32>
    %12 = arith.shrsi %7, %11 : vector<16x1xi32>
    %cst_8 = arith.constant 1.000000e+00 : f32
    %13 = vector.broadcast %cst_8 : f32 to vector<16x1xf32>
    %14 = arith.subf %13, %10 : vector<16x1xf32>
    %cst_9 = arith.constant -1.000000e+32 : f32
    %15 = vector.broadcast %cst_9 : f32 to vector<16x1xf32>
    %16 = arith.mulf %14, %15 : vector<16x1xf32>
    %17 = vector.broadcast %16 : vector<16x1xf32> to vector<16x16xf32>
    %18 = arith.addf %6, %17 : vector<16x16xf32>
    %cst_10 = arith.constant dense<0xFF800000> : vector<16xf32>
    %19 = vector.multi_reduction <maximumf>, %18, %cst_10 [1] : vector<16x16xf32> to vector<16xf32>
    %20 = vector.shape_cast %19 : vector<16xf32> to vector<16x1xf32>
    %21 = vector.broadcast %20 : vector<16x1xf32> to vector<16x16xf32>
    %22 = arith.subf %18, %21 : vector<16x16xf32>
    %23 = math.exp %22 : vector<16x16xf32>
    %cst_11 = arith.constant dense<0.000000e+00> : vector<16xf32>
    %24 = vector.multi_reduction <add>, %23, %cst_11 [1] : vector<16x16xf32> to vector<16xf32>
    %25 = vector.shape_cast %24 : vector<16xf32> to vector<16x1xf32>
    %26 = tpu.reciprocal %25 {approx = true} : vector<16x1xf32> -> vector<16x1xf32>
    %27 = vector.broadcast %26 : vector<16x1xf32> to vector<16x16xf32>
    %28 = arith.mulf %23, %27 : vector<16x16xf32>
    %c0_12 = arith.constant 0 : index
    %c0_13 = arith.constant 0 : index
    %29 = vector.load %arg5[%c0_12, %c0_13] : memref<16x16xf32, #tpu.memory_space<vmem>>, vector<16x16xf32>
    tpu.vector_store %arg5[%c0_12, %c0_13], %28 {strides = array<i32>} : memref<16x16xf32, #tpu.memory_space<vmem>>, vector<16x16xf32>,
    %30 = vector.broadcast %20 : vector<16x1xf32> to vector<16x16xf32>
    %31 = arith.subf %18, %30 : vector<16x16xf32>
    %32 = math.log %25 : vector<16x1xf32>
    %33 = vector.broadcast %32 : vector<16x1xf32> to vector<16x16xf32>
    %34 = arith.subf %31, %33 : vector<16x16xf32>
    %35 = tpu.iota {dimensions = array<i32: 1>} : vector<16x16xi32>
    %36 = vector.broadcast %12 : vector<16x1xi32> to vector<16x16xi32>
    %37 = arith.cmpi eq, %35, %36 : vector<16x16xi32>
    %38 = arith.extui %37 : vector<16x16xi1> to vector<16x16xi32>
    %39 = arith.sitofp %38 : vector<16x16xi32> to vector<16x16xf32>
    %40 = arith.mulf %39, %34 : vector<16x16xf32>
    %cst_14 = arith.constant dense<0.000000e+00> : vector<16xf32>
    %41 = vector.multi_reduction <add>, %40, %cst_14 [1] : vector<16x16xf32> to vector<16xf32>
    %42 = vector.shape_cast %41 : vector<16xf32> to vector<16x1xf32>
    %cst_15 = arith.constant 0.000000e+00 : f32
    %43 = vector.broadcast %cst_15 : f32 to vector<16x1xf32>
    %44 = arith.subf %43, %42 : vector<16x1xf32>
    %c0_i32 = arith.constant 0 : i32
    %45 = vector.broadcast %c0_i32 : i32 to vector<16x1xi32>
    %46 = arith.cmpi ne, %12, %45 : vector<16x1xi32>
    %47 = arith.extui %46 : vector<16x1xi1> to vector<16x1xi32>
    %48 = arith.sitofp %47 : vector<16x1xi32> to vector<16x1xf32>
    %49 = arith.mulf %44, %48 : vector<16x1xf32>
    %50 = vector.shape_cast %49 : vector<16x1xf32> to vector<1x16x1xf32>
    %cst_16 = arith.constant dense<0.000000e+00> : vector<1xf32>
    %51 = vector.multi_reduction <add>, %50, %cst_16 [1, 2] : vector<1x16x1xf32> to vector<1xf32>
    %52 = vector.shape_cast %51 : vector<1xf32> to vector<1x1x1xf32>
    %53 = vector.extract %52[0, 0, 0] : f32 from vector<1x1x1xf32>
    %54 = vector.shape_cast %48 : vector<16x1xf32> to vector<1x16x1xf32>
    %cst_17 = arith.constant dense<0.000000e+00> : vector<1xf32>
    %55 = vector.multi_reduction <add>, %54, %cst_17 [1, 2] : vector<1x16x1xf32> to vector<1xf32>
    %56 = vector.shape_cast %55 : vector<1xf32> to vector<1x1x1xf32>
    %57 = vector.extract %56[0, 0, 0] : f32 from vector<1x1x1xf32>
    %58 = tpu.iota {dimensions = array<i32: 0>} : vector<8x128xi32>
    %59 = tpu.iota {dimensions = array<i32: 1>} : vector<8x128xi32>
    %c0_i32_18 = arith.constant 0 : i32
    %60 = vector.broadcast %c0_i32_18 : i32 to vector<8x128xi32>
    %61 = arith.cmpi eq, %58, %60 : vector<8x128xi32>
    %c0_i32_19 = arith.constant 0 : i32
    %62 = vector.broadcast %c0_i32_19 : i32 to vector<8x128xi32>
    %63 = arith.cmpi eq, %59, %62 : vector<8x128xi32>
    %64 = arith.andi %61, %63 : vector<8x128xi1>
    %c0_i32_20 = arith.constant 0 : i32
    %65 = vector.broadcast %c0_i32_20 : i32 to vector<8x128xi32>
    %66 = arith.cmpi eq, %58, %65 : vector<8x128xi32>
    %c1_i32_21 = arith.constant 1 : i32
    %67 = vector.broadcast %c1_i32_21 : i32 to vector<8x128xi32>
    %68 = arith.cmpi eq, %59, %67 : vector<8x128xi32>
    %69 = arith.andi %66, %68 : vector<8x128xi1>
    %cst_22 = arith.constant 0.000000e+00 : f32
    %70 = vector.broadcast %57 : f32 to vector<8x128xf32>
    %71 = vector.broadcast %cst_22 : f32 to vector<8x128xf32>
    %72 = arith.select %69, %70, %71 : vector<8x128xi1>, vector<8x128xf32>
    %73 = vector.broadcast %53 : f32 to vector<8x128xf32>
    %74 = arith.select %64, %73, %72 : vector<8x128xi1>, vector<8x128xf32>
    %c0_23 = arith.constant 0 : index
    %c0_24 = arith.constant 0 : index
    %75 = vector.load %arg6[%c0_23, %c0_24] : memref<8x128xf32, #tpu.memory_space<vmem>>, vector<8x128xf32>
    tpu.vector_store %arg6[%c0_23, %c0_24], %74 {strides = array<i32>} : memref<8x128xf32, #tpu.memory_space<vmem>>, vector<8x128xf32>,
    return
  }
  func.func @transform_0(%arg0: i32) -> (i32, i32) {
    %c0_i32 = arith.constant 0 : i32
    %c0_i32_0 = arith.constant 0 : i32
    return %arg0, %c0_i32 : i32, i32
  }
  func.func @transform_1(%arg0: i32) -> (i32, i32) {
    %c0_i32 = arith.constant 0 : i32
    %c0_i32_0 = arith.constant 0 : i32
    %c0_i32_1 = arith.constant 0 : i32
    return %c0_i32, %c0_i32_0 : i32, i32
  }
  func.func @transform_2(%arg0: i32) -> (i32, i32) {
    %c0_i32 = arith.constant 0 : i32
    %c0_i32_0 = arith.constant 0 : i32
    %c0_i32_1 = arith.constant 0 : i32
    return %c0_i32, %c0_i32_0 : i32, i32
  }
  func.func @transform_3(%arg0: i32) -> (i32, i32) {
    %c0_i32 = arith.constant 0 : i32
    %c0_i32_0 = arith.constant 0 : i32
    return %arg0, %c0_i32 : i32, i32
  }
  func.func @transform_4(%arg0: i32) -> (i32, i32) {
    %c0_i32 = arith.constant 0 : i32
    %c0_i32_0 = arith.constant 0 : i32
    return %arg0, %c0_i32 : i32, i32
  }
  func.func @transform_5(%arg0: i32) -> (i32, i32) {
    %c0_i32 = arith.constant 0 : i32
    %c0_i32_0 = arith.constant 0 : i32
    return %arg0, %c0_i32 : i32, i32
  }
}

</mosaic_0001>

<bundles_post_ra>
// kernel: tpu_custom_call.1
= control target key start
LH: loop header
LB: loop body
LE: loop exit
PB: predicated region body
PF: predicated region fallthrough
CT: control target
= control target key end

     0   :  { %11 = vsyncpa [#allocation3], 0  ;;  %v337_v1 = vmov 0.0   ;;  %vm338_vm0 = vmmov 0   ;;  %v339_v6 = vmov 0   ;;  %s432_s0 = inlined_call_operand.vmem [shape: f32[16,32], index: 0, kind: input, shape index: {}]   ;;  %s433_s1 = inlined_call_operand.vmem [shape: bf16[32,16], index: 1, kind: input, shape index: {}]   ;;  %s434_s2 = inlined_call_operand.vmem [shape: f32[1,16], index: 2, kind: input, shape index: {}]   ;;  %s435_s3 = inlined_call_operand.vmem [shape: s32[16,1], index: 3, kind: input, shape index: {}]   ;;  %s436_s4 = inlined_call_operand.hbm [shape: f32[16,16], index: 4, kind: output, shape index: {0}]   ;;  %s437_s5 = inlined_call_operand.hbm [shape: f32[8,128], index: 5, kind: output, shape index: {1}]  }
   0x1   :  { %v279_v0 = vld [vmem:[%s433_s1 + $0x8] sm:$0xff]   ;;  %258 = vmatprep.subr.bf16.mxu0 %v337_v1  ;;  %v280_v2 = vld [vmem:[%s433_s1] sm:$0xff]   ;;  %262 = vmatprep.mubr.msk.bf16.mxu0 %vm338_vm0, %v337_v1 }
   0x2   :  { %259 = vmatpush3.bf16.msra.mxu0 %v279_v0  ;;  %v22_v3 = vld [vmem:[%s432_s0] sm:$0xff]  ;;  %v23_v4 = vld [vmem:[%s432_s0 + $0x8] sm:$0xff]  ;;  %277 = vset.pattern.permute.xlu0 %v339_v6 }
   0x3   :  { %v391_v5 = vld [vmem:[%s435_s3] sm:$0xff]  ;;  %260 = vmatprep.subr.bf16.mxu0 %v337_v1  ;;  %v398_v8 = vld [vmem:[%s435_s3 + $0x8] sm:$0xff] }
   0x4   :  { %v95_v7 = vand.u32 1, %v391_v5 }
   0x5   :  { %12 = vsyncpa [#allocation5], 0  ;;  %v96_v9 = vand.u32 1, %v398_v8  ;;  %278 = vset.pattern.permute.xlu1 %v339_v6  ;;  %v24_v10 = vpack.c.bf16 %v23_v4, %v22_v3  ;;  %vm48_vm1 = vcmask 261120   ;;  %v247_v17 = vld [vmem:[%s434_s2] ss:$0 sm:$0xff]  ;;  %v148_v45 = vlaneseq }
   0x6   :  { %v97_v11 = vcvt.s32.f32 %v95_v7  ;;  %261 = vmatpush3.bf16.msra.mxu0 %v280_v2  ;;  %vm117_vm2 = vcmask 130048   ;;  %v99_v30 = vshra.s32 %v391_v5, 1  ;;  %v100_v41 = vshra.s32 %v398_v8, 1  ;;  %s340_s2 = smov [#allocation2]  }
   0x7   :  { %v98_v12 = vcvt.s32.f32 %v96_v9  ;;  %v411_v46 = vand.u32 127, %v148_v45  ;;  %vm180_vm7 = vcmask 7168   ;;  %s222_s3 = sshll.u32 %s340_s2, 4  ;;  %s223_s3 = int_to_ptr.vmem [resolvable:$true] %s222_s3 }
   0x8   :  { %v101_v13 = vsub.f32 1.0, %v97_v11  ;;  %vm172_vm5 = vcmp.ne.s32.totalorder %v99_v30, 0  ;;  %vm173_vm6 = vcmp.ne.s32.totalorder %v100_v41, 0  ;;  %s293_s30 = scalar_lea.vmem %s223_s3, 256  ;;  %p298_p1 = scmp.lt.s32.totalorder %s223_s3, %s223_s3 }
   0x9   :  { %v102_v14 = vsub.f32 1.0, %v98_v12  ;;  %263 = vmatmul.mubr.msk.bf16.vlgmr.msra.gmra.mxu0 %vm48_vm1, %v24_v10  ;;  %v253_v3 = vsel %vm172_vm5, 1.0, %v337_v1  ;;  %v254_v4 = vsel %vm173_vm6, 1.0, %v337_v1  ;;  %p294_p0 = scmp.ne.s32.totalorder %s223_s3, %s293_s30  ;;  %p299_p2 = scmp.lt.s32.totalorder %s293_s30, %s293_s30 }
   0xa   :  { %v103_v15 = vmul.f32 -1e+32, %v101_v13  ;;  %v193_v11 = vsel %vm180_vm7, %v253_v3, 0.0  ;;  %v194_v12 = vsel %vm180_vm7, %v254_v4, 0.0 }
   0xb   :  { %v104_v16 = vmul.f32 -1e+32, %v102_v14  ;;  %v195_v14 = vadd.f32 %v194_v12, %v193_v11  ;;  %p300_p3 = por %p299_p2, %p298_p1 }
   0xc   :  { %107 = vperm.xlu0 %277, %v103_v15  }
   0xd   :  { %p301_p4 = pnand %p300_p3, %p294_p0 }
  0x10   :  { %112 = vperm.xlu0 %277, %v104_v16  }
  0x87   :  { %v108_v18 = vpop.permute.xlu0 %107 }
  0x8b   :  { %v113_v26 = vpop.permute.xlu0 %112 }
  0xc9   :  { %v86_v19 = vpop.f32.mrf.mxu0 }
  0xca   :  { %v87_v20 = vadd.f32 %v247_v17, %v86_v19 }
  0xcb   :  { %v264_v21 = vpop.f32.mrf.mxu0 }
  0xcc   :  { %v115_v22 = vadd.f32 %v108_v18, %v87_v20 }
  0xcd   :  { %v89_v23 = vpop.f32.mrf.mxu0 }
  0xce   :  { %v90_v24 = vadd.f32 %v247_v17, %v89_v23  ;;  %v118_v25 = vsel %vm117_vm2, %v115_v22, -inf }
  0xcf   :  { %119 = vmax.xlane.f32.xlu1 %v118_v25  ;;  %v265_v27 = vpop.f32.mrf.mxu0 }
  0xd0   :  { %v116_v28 = vadd.f32 %v113_v26, %v90_v24 }
  0xd2   :  { %v121_v29 = vsel %vm117_vm2, %v116_v28, -inf }
  0xd3   :  { %122 = vmax.xlane.f32.xlu1 %v121_v29 }
  0xe4   :  { %151 = vperm.xlu1 %278, %v99_v30  }
 0x158   :  { %v120_v31 = vpop.xlane.xlu1 %119 }
 0x159   :  { %v124_v32 = vsub.f32 %v115_v22, %v120_v31 }
 0x15b   :  { %v126_v33 = vmul.f32 1.442695, %v124_v32 }
 0x15c   :  { %v123_v34 = vpop.xlane.xlu1 %122 }
 0x15d   :  { %281 = vpow2.f32 %v126_v33  ;;  %v125_v35 = vsub.f32 %v116_v28, %v123_v34 }
 0x15f   :  { %v128_v36 = vmul.f32 1.442695, %v125_v35 }
 0x160   :  { %v152_v42 = vpop.permute.xlu1 %151 }
 0x161   :  { %283 = vpow2.f32 %v128_v36  ;;  %vm156_vm3 = vcmp.eq.s32.totalorder %v411_v46, %v152_v42 }
 0x162   :  { %v251_v55 = vsel %vm156_vm3, 1.0, %v337_v1 }
 0x16a   :  { %v282_v37 = vpop.eup %281 }
 0x16b   :  { %v130_v38 = vsel %vm117_vm2, %v282_v37, 0.0 }
 0x16c   :  { %131 = vadd.xlane.f32.xlu0 %v130_v38 }
 0x16e   :  { %v284_v39 = vpop.eup %283 }
 0x16f   :  { %v133_v40 = vsel %vm117_vm2, %v284_v39, 0.0 }
 0x170   :  { %134 = vadd.xlane.f32.xlu1 %v133_v40 }
 0x181   :  { %154 = vperm.xlu1 %278, %v100_v41  }
 0x1f5   :  { %v132_v43 = vpop.xlane.xlu0 %131 }
 0x1f6   :  { %285 = vrcp.f32 %v132_v43 }
 0x1f7   :  { %287 = vlog2.f32 %v132_v43 }
 0x1f9   :  { %v135_v44 = vpop.xlane.xlu1 %134 }
 0x1fa   :  { %289 = vrcp.f32 %v135_v44 }
 0x1fb   :  { %291 = vlog2.f32 %v135_v44 }
 0x1fd   :  { %v155_v51 = vpop.permute.xlu1 %154 }
 0x1fe   :  { %vm157_vm4 = vcmp.eq.s32.totalorder %v411_v46, %v155_v51 }
 0x1ff   :  { %v252_v61 = vsel %vm157_vm4, 1.0, %v337_v1 }
 0x203   :  { %v286_v47 = vpop.eup %285 }
 0x204   :  { %v288_v48 = vpop.eup %287  ;;  %v138_v49 = vmul.f32 %v286_v47, %v282_v37 }
 0x205   :  { %v143_v50 = vmul.f32 0.6931472, %v288_v48 }
 0x206   :  { %140 = vst.msk [vmem:[#allocation2] sm:$0xff] %vm117_vm2, %v138_v49 }
 0x207   :  { %v290_v52 = vpop.eup %289  ;;  %v146_v53 = vsub.f32 %v124_v32, %v143_v50 }
 0x208   :  { %v292_v54 = vpop.eup %291  ;;  %v139_v56 = vmul.f32 %v290_v52, %v284_v39 }
 0x209   :  { %v145_v57 = vmul.f32 0.6931472, %v292_v54  ;;  %v162_v58 = vmul.f32 %v251_v55, %v146_v53 }
 0x20a   :  { %141 = vst.msk [vmem:[#allocation2 + $0x8] sm:$0xff] %vm117_vm2, %v139_v56 }
 0x20b   :  { %v164_v59 = vsel %vm117_vm2, %v162_v58, 0.0  ;;  %v147_v60 = vsub.f32 %v125_v35, %v145_v57 }
 0x20c   :  { %165 = vadd.xlane.f32.xlu1 %v164_v59 }
 0x20d   :  { %v163_v62 = vmul.f32 %v252_v61, %v147_v60 }
 0x20f   :  { %v167_v63 = vsel %vm117_vm2, %v163_v62, 0.0 }
 0x210   :  { %168 = vadd.xlane.f32.xlu0 %v167_v63 }
 0x295   :  { %v166_v0 = vpop.xlane.xlu1 %165 }
 0x296   :  { %v170_v2 = vsub.f32 0.0, %v166_v0 }
 0x298   :  { %v178_v6 = vmul.f32 %v253_v3, %v170_v2 }
 0x299   :  { %v169_v5 = vpop.xlane.xlu0 %168 }
 0x29a   :  { %v171_v7 = vsub.f32 0.0, %v169_v5  ;;  %v181_v9 = vsel %vm180_vm7, %v178_v6, 0.0 }
 0x29c   :  { %v179_v8 = vmul.f32 %v254_v4, %v171_v7 }
 0x29e   :  { %v182_v10 = vsel %vm180_vm7, %v179_v8, 0.0 }
 0x29f   :  { %v183_v13 = vadd.f32 %v182_v10, %v181_v9 }
 0x2a1   :  { %184 = vadd.xlane.f32.xlu0 %v183_v13 }
 0x2a5   :  { %196 = vadd.xlane.f32.xlu0 %v195_v14 }
 0x2a6   :  { %304 = shalt.err (!%p301_p4)
}
 0x2a7   :  { %s341_s6 = smov 128   ;;  %s342_s7 = smov 8   ;;  %v206_v28 = vshrl.u32 %v148_v45, 7  ;;  %vm210_vm9 = vcmp.eq.s32.totalorder %v411_v46, 1  ;;  %vm208_vm10 = vcmp.eq.s32.totalorder %v411_v46, 0 }
 0x2a8   :  { %228 = dma.vmem_to_hbm [thread:$0]  %s223_s3, 256, %s436_s4, [#allocation3], %s341_s6, %s341_s6, %s342_s7  }
 0x2a9   :  { %vm207_vm8 = vcmp.eq.s32.totalorder %v206_v28, 0  ;;  %s343_s10 = smov [#allocation4]  }
 0x2aa   :  { %vm211_vm11 = vmand %vm207_vm8, %vm210_vm9  ;;  %s235_s11 = sshll.u32 %s343_s10, 4  ;;  %s236_s11 = int_to_ptr.vmem [resolvable:$true] %s235_s11 }
 0x2ab   :  { %vm209_vm12 = vmand %vm207_vm8, %vm208_vm10  ;;  %s313_s13 = scalar_lea.vmem %s236_s11, 128  ;;  %p318_p6 = scmp.lt.s32.totalorder %s236_s11, %s236_s11 }
 0x2ac   :  { %p314_p5 = scmp.ne.s32.totalorder %s236_s11, %s313_s13  ;;  %p319_p7 = scmp.lt.s32.totalorder %s313_s13, %s313_s13 }
 0x2ae   :  { %p320_p8 = por %p319_p7, %p318_p6 }
 0x2b0   :  { %p321_p9 = pnand %p320_p8, %p314_p5 }
 0x32a   :  { %v185_v1 = vpop.xlane.xlu0 %184 }
 0x32b   :  { %v186_v15 = vrot.slane %v185_v1, 4 }
 0x32d   :  { %v187_v16 = vadd.f32 %v186_v15, %v185_v1 }
 0x32e   :  { %v197_v17 = vpop.xlane.xlu0 %196 }
 0x32f   :  { %v188_v18 = vrot.slane %v187_v16, 2  ;;  %v198_v19 = vrot.slane %v197_v17, 4 }
 0x331   :  { %v199_v20 = vadd.f32 %v198_v19, %v197_v17  ;;  %v189_v21 = vadd.f32 %v188_v18, %v187_v16 }
 0x333   :  { %v200_v22 = vrot.slane %v199_v20, 2  ;;  %v190_v23 = vrot.slane %v189_v21, 1 }
 0x335   :  { %v201_v24 = vadd.f32 %v200_v22, %v199_v20  ;;  %v191_v25 = vadd.f32 %v190_v23, %v189_v21 }
 0x337   :  { %266 = vpush %v191_v25  ;;  %v202_v26 = vrot.slane %v201_v24, 1 }
 0x339   :  { %v203_v27 = vadd.f32 %v202_v26, %v201_v24 }
 0x33b   :  { %268 = vpush %v203_v27 }
 0x368   :  { %s267_s4 = spop %266 }
 0x369   :  { %v214_v30 = vstv %s267_s4 }
 0x36c   :  { %s269_s12 = spop %268 }
 0x36d   :  { %v212_v29 = vstv %s269_s12 }
 0x36e   :  { %v213_v31 = vsel %vm211_vm11, %v212_v29, 0.0 }
 0x36f   :  { %v215_v32 = vsel %vm209_vm12, %v214_v30, %v213_v31 }
 0x370   :  { %216 = vst [vmem:[#allocation4] sm:$0xff] %v215_v32 }
 0x371   :  { %324 = shalt.err (!%p321_p9)
}
 0x372   :  { %238 = dma.vmem_to_hbm [thread:$0]  %s236_s11, 128, %s437_s5, [#allocation5]  }
 0x373   :  { %333 = dma.done.wait [#allocation3], 256  }
 0x374   :  { %334 = vsyncadd [#allocation3], 4294967040 }
 0x375   :  { %335 = dma.done.wait [#allocation5], 128  }
 0x376   :  { %336 = vsyncadd [#allocation5], 4294967168 }
 0x377   :  { %245 = vsyncpa [#allocation3], 1 }
 0x378   :  { %246 = vsyncpa [#allocation5], 1 }

</bundles_post_ra>
